<compile_context>
chip_gen: v6e
topology: v6e:2x2x1
jax: 0.10.0
libtpu: 0.0.40
codegen_flags: <defaults>
</compile_context>

<pallas_src>
import math
from functools import partial

import jax
import jax.numpy as jnp
from jax import lax
from jax.experimental import pallas as pl
from jax.experimental.pallas import tpu as pltpu


# ----------------------------- Pallas kernels ------------------------------ #

def _ln_qkv_rope_kernel(x_ref, g_ref, b_ref, w_ref, cos_ref, sina_ref, sinb_ref,
                        q_ref, k_ref, v_ref, *, eps, rot_shift, q_scale, mxu_dtype):
    """Fused LayerNorm + QKV projection + rotary embedding.

    x_ref:(1,ts,D)  w_ref:(D,3D) resident (mxu_dtype)  cos/sina/sinb:(ts,D)
    outputs q/k/v:(1,ts,D) lane-dense; q is pre-scaled by 1/sqrt(head_dim).
    """
    D = x_ref.shape[-1]
    x = x_ref[0].astype(jnp.float32)                      # (ts, D)

    # LayerNorm in f32 (VPU).
    mu = jnp.mean(x, axis=-1, keepdims=True)
    xc = x - mu
    var = jnp.mean(xc * xc, axis=-1, keepdims=True)
    xn = xc * lax.rsqrt(var + eps)
    xn = xn * g_ref[...] + b_ref[...]

    # QKV projection on the MXU (bf16 feeds by default, f32 accumulate).
    qkv = jnp.dot(xn.astype(mxu_dtype), w_ref[...],
                  preferred_element_type=jnp.float32)     # (ts, 3D)
    q = qkv[:, :D] * q_scale      # fold 1/sqrt(Dh) into q, not into (S,S) scores
    k = qkv[:, D:2 * D]
    v = qkv[:, 2 * D:]

    cosf = cos_ref[...]
    sina = sina_ref[...]
    sinb = sinb_ref[...]

    def rope(t):
        # rotate_half via XLU lane rolls (no MXU permutation matmul):
        #   roll(t, D - s)[j] = t[j + s]   (partner for the first rotary half)
        #   roll(t, s)[j]     = t[j - s]   (partner for the second rotary half)
        # sina = -sin on the first half, sinb = +sin on the second half, 0 elsewhere,
        # so cross-head / wrap-around lanes are masked out by the tables.
        return (t * cosf
                + pltpu.roll(t, D - rot_shift, axis=1) * sina
                + pltpu.roll(t, rot_shift, axis=1) * sinb)

    q_ref[0] = rope(q).astype(q_ref.dtype)
    k_ref[0] = rope(k).astype(k_ref.dtype)
    v_ref[0] = v.astype(v_ref.dtype)


def _flash_attn_outproj_kernel(q_ref, k_ref, v_ref, w_ref, o_ref,
                               m_sc, l_sc, acc_sc,
                               *, n_heads, head_dim, mxu_dtype):
    """Causal flash attention on lane-dense (B, S, H*Dh) q/k/v + fused out_proj.

    grid = (B, num_q_tiles, num_kv_tiles), kv axis last + "arbitrary".
    Per-head online-softmax state persists in VMEM scratch across kv steps.
    q arrives already rotary-embedded and pre-scaled by 1/sqrt(head_dim).
    At the last kv step the heads are normalized, concatenated lane-dense and
    multiplied by the resident out_proj weight before the single HBM store.
    """
    qi = pl.program_id(1)
    ki = pl.program_id(2)
    nk = pl.num_programs(2)
    neg_big = -1e30

    @pl.when(ki == 0)
    def _init():
        m_sc[...] = jnp.full(m_sc.shape, neg_big, m_sc.dtype)
        l_sc[...] = jnp.zeros(l_sc.shape, l_sc.dtype)
        acc_sc[...] = jnp.zeros(acc_sc.shape, acc_sc.dtype)

    def _accumulate(masked):
        q = q_ref[0]                                      # (tq, D)
        k = k_ref[0]                                      # (tkv, D)
        v = v_ref[0]
        tq, tkv = q.shape[0], k.shape[0]
        if masked:  # diagonal tile (qi == ki, tq == tkv): causal mask needed
            row = lax.broadcasted_iota(jnp.int32, (tq, tkv), 0)
            col = lax.broadcasted_iota(jnp.int32, (tq, tkv), 1)
            visible = col <= row
        nt_dims = (((1,), (1,)), ((), ()))                # contract head_dim, no .T
        for h in range(n_heads):
            sl = slice(h * head_dim, (h + 1) * head_dim)
            s = lax.dot_general(q[:, sl], k[:, sl], nt_dims,
                                preferred_element_type=jnp.float32)   # (tq, tkv)
            if masked:
                s = jnp.where(visible, s, neg_big)
            m_prev = m_sc[h]                              # (tq, 1)
            m_new = jnp.maximum(m_prev, jnp.max(s, axis=-1, keepdims=True))
            alpha = jnp.exp(m_prev - m_new)
            p = jnp.exp(s - m_new)
            l_sc[h] = alpha * l_sc[h] + jnp.sum(p, axis=-1, keepdims=True)
            acc_sc[h] = alpha * acc_sc[h] + jnp.dot(
                p.astype(mxu_dtype), v[:, sl], preferred_element_type=jnp.float32)
            m_sc[h] = m_new

    @pl.when(ki < qi)            # fully-visible tile: no causal-mask math
    def _():
        _accumulate(masked=False)

    @pl.when(ki == qi)           # diagonal tile: masked
    def _():
        _accumulate(masked=True)

    # ki > qi: fully-masked kv tile -> no compute, and its k/v block index maps
    # to min(ki, qi) in the wrapper so no DMA is issued for it either.

    @pl.when(ki == nk - 1)
    def _finalize():
        # Normalize per head (EUP approx reciprocal), concatenate lane-dense,
        # run the fused out_proj matmul on the MXU, single lane-dense HBM store.
        heads = []
        for h in range(n_heads):
            inv_l = pl.reciprocal(l_sc[h], approx=True)
            heads.append(acc_sc[h] * inv_l)
        attn = jnp.concatenate(heads, axis=-1)            # (tq, D) f32
        o_ref[0] = jnp.dot(attn.astype(mxu_dtype), w_ref[...],
                           preferred_element_type=jnp.float32).astype(o_ref.dtype)


# ------------------------------ Parameter setup ---------------------------- #

def make_axial_pos(h, w):
    h_pos = jnp.linspace(-1.0, 1.0, h + 1)
    w_pos = jnp.linspace(-1.0, 1.0, w + 1)
    h_pos = (h_pos[:-1] + h_pos[1:]) / 2
    w_pos = (w_pos[:-1] + w_pos[1:]) / 2
    hh, ww = jnp.meshgrid(h_pos, w_pos, indexing="ij")
    return jnp.stack([hh, ww], axis=-1).reshape(h * w, 2)


def init_params(key, dim, head_dim):
    """Deterministic params. Linear weights stored transposed: (in, out)."""
    bound = 1.0 / math.sqrt(dim)
    qkv_w = jax.random.uniform(key, (dim, 3 * dim), jnp.float32, -bound, bound)
    out_w = jnp.zeros((dim, dim), jnp.float32)   # zero_init(out_proj)
    ln_g = jnp.ones((1, dim), jnp.float32)
    ln_b = jnp.zeros((1, dim), jnp.float32)

    log_min, log_max = math.log(math.pi), math.log(10 * math.pi)
    freqs = jnp.exp(jnp.linspace(log_min, log_max, head_dim // 8))
    pos = jnp.concatenate([jnp.zeros((1, 2)), make_axial_pos(32, 32)], axis=0)
    theta_h = pos[:, 0:1] * freqs
    theta_w = pos[:, 1:2] * freqs
    theta = jnp.concatenate([theta_h, theta_w], axis=-1)    # (1025, head_dim // 4)
    return dict(qkv_w=qkv_w, out_w=out_w, ln_g=ln_g, ln_b=ln_b,
                cos=jnp.cos(theta).astype(jnp.float32),
                sin=jnp.sin(theta).astype(jnp.float32))


# ------------------------------ Forward wrapper ---------------------------- #

def self_attention_forward(x, params, head_dim, *, mxu_dtype=jnp.bfloat16,
                           seq_tile=32, eps=1e-5, vmem_limit=32 * 1024 * 1024):
    B, S, D = x.shape
    H = D // head_dim
    assert D == H * head_dim
    assert head_dim % 8 == 0, "module requires head_dim divisible by 8"
    ts = min(seq_tile, S)   # raise to 256-512 for production S (HBM roofline)
    assert S % ts == 0 and ts % 8 == 0

    store_dtype = jnp.bfloat16 if mxu_dtype == jnp.bfloat16 else x.dtype

    # --- pre-expanded rotary tables in the lane-dense (S, D=H*Dh) layout --- #
    rh = params["cos"].shape[-1]            # head_dim // 4 (half the rotary dims)
    ro = 2 * rh                             # rotary dims per head
    pad = head_dim - ro
    cos_s = params["cos"][:S].astype(jnp.float32)
    sin_s = params["sin"][:S].astype(jnp.float32)
    zeros = lambda w: jnp.zeros((S, w), jnp.float32)
    cos_h = jnp.concatenate([cos_s, cos_s, jnp.ones((S, pad), jnp.float32)], -1)
    sina_h = jnp.concatenate([-sin_s, zeros(rh + pad)], -1)
    sinb_h = jnp.concatenate([zeros(rh), sin_s, zeros(pad)], -1)
    cos_f = jnp.tile(cos_h, (1, H))         # (S, D)
    sina_f = jnp.tile(sina_h, (1, H))
    sinb_f = jnp.tile(sinb_h, (1, H))

    # Feed the MXU (and HBM) with bf16 weights by default; resident via constant
    # index_maps so they are DMA'd once, not per grid step.
    qkv_w = params["qkv_w"].astype(mxu_dtype)
    out_w = params["out_w"].astype(mxu_dtype)

    grid_rows = (B, S // ts)
    cparams_rows = pltpu.CompilerParams(
        dimension_semantics=("parallel", "parallel"),
        vmem_limit_bytes=vmem_limit)

    # --- kernel A: LayerNorm + QKV + rotary (q pre-scaled) --- #
    q, k, v = pl.pallas_call(
        partial(_ln_qkv_rope_kernel, eps=eps, rot_shift=rh,
                q_scale=1.0 / math.sqrt(head_dim), mxu_dtype=mxu_dtype),
        out_shape=(jax.ShapeDtypeStruct((B, S, D), store_dtype),) * 3,
        grid=grid_rows,
        in_specs=[
            pl.BlockSpec((1, ts, D), lambda b, s: (b, s, 0)),
            pl.BlockSpec((1, D), lambda b, s: (0, 0)),
            pl.BlockSpec((1, D), lambda b, s: (0, 0)),
            pl.BlockSpec((D, 3 * D), lambda b, s: (0, 0)),
            pl.BlockSpec((ts, D), lambda b, s: (s, 0)),
            pl.BlockSpec((ts, D), lambda b, s: (s, 0)),
            pl.BlockSpec((ts, D), lambda b, s: (s, 0)),
        ],
        out_specs=(pl.BlockSpec((1, ts, D), lambda b, s: (b, s, 0)),) * 3,
        compiler_params=cparams_rows,
    )(x, params["ln_g"], params["ln_b"], qkv_w, cos_f, sina_f, sinb_f)

    # --- kernel B: causal flash attention + fused out_proj --- #
    # k/v index_map uses min(ki, qi): for fully-masked kv tiles (ki > qi) the
    # block index is unchanged from the previous step, so no DMA is issued.
    tq = tkv = ts
    out = pl.pallas_call(
        partial(_flash_attn_outproj_kernel, n_heads=H, head_dim=head_dim,
                mxu_dtype=mxu_dtype),
        out_shape=jax.ShapeDtypeStruct((B, S, D), x.dtype),
        grid=(B, S // tq, S // tkv),
        in_specs=[
            pl.BlockSpec((1, tq, D), lambda b, qi, ki: (b, qi, 0)),
            pl.BlockSpec((1, tkv, D), lambda b, qi, ki: (b, jnp.minimum(ki, qi), 0)),
            pl.BlockSpec((1, tkv, D), lambda b, qi, ki: (b, jnp.minimum(ki, qi), 0)),
            pl.BlockSpec((D, D), lambda b, qi, ki: (0, 0)),
        ],
        out_specs=pl.BlockSpec((1, tq, D), lambda b, qi, ki: (b, qi, 0)),
        scratch_shapes=[
            pltpu.VMEM((H, tq, 1), jnp.float32),          # running max  m
            pltpu.VMEM((H, tq, 1), jnp.float32),          # running sum  l
            pltpu.VMEM((H, tq, head_dim), jnp.float32),   # output accumulator
        ],
        compiler_params=pltpu.CompilerParams(
            dimension_semantics=("parallel", "parallel", "arbitrary"),
            vmem_limit_bytes=vmem_limit),
    )(q, k, v, out_w)

    return out


# ------------------------------ Pure-JAX reference -------------------------- #

def reference_forward(x, params, head_dim):
    B, S, D = x.shape
    H = D // head_dim
    mu = x.mean(-1, keepdims=True)
    var = ((x - mu) ** 2).mean(-1, keepdims=True)
    xn = (x - mu) / jnp.sqrt(var + 1e-5) * params["ln_g"][0] + params["ln_b"][0]
    qkv = xn @ params["qkv_w"]
    qkv = qkv.reshape(B, S, 3, H, head_dim)
    q, k, v = qkv[:, :, 0], qkv[:, :, 1], qkv[:, :, 2]      # (B,S,H,Dh)

    cos = params["cos"][:S][None, :, None, :]
    sin = params["sin"][:S][None, :, None, :]
    ro = 2 * params["cos"].shape[-1]

    def rot(t):
        t1, t2, tp = t[..., :ro // 2], t[..., ro // 2:ro], t[..., ro:]
        return jnp.concatenate([t1 * cos - t2 * sin, t2 * cos + t1 * sin, tp], -1)

    q, k = rot(q), rot(k)
    q, k, v = (t.transpose(0, 2, 1, 3) for t in (q, k, v))  # (B,H,S,Dh)
    s = jnp.einsum("bhqd,bhkd->bhqk", q, k,
                   precision=lax.Precision.HIGHEST) / math.sqrt(head_dim)
    mask = jnp.tril(jnp.ones((S, S), bool))
    s = jnp.where(mask, s, -jnp.inf)
    p = jax.nn.softmax(s, axis=-1)
    o = jnp.einsum("bhqk,bhkd->bhqd", p, v, precision=lax.Precision.HIGHEST)
    o = o.transpose(0, 2, 1, 3).reshape(B, S, D)
    return o @ params["out_w"]


# ----------------------------------- main ----------------------------------- #

if __name__ == "__main__":
    # dim=128, head_dim=32 -> H=4 heads, D = H*Dh = 128 = one full lane vreg:
    # all blocks are lane-dense and rotary / head slices land on clean lane offsets.
    B, S, dim, head_dim = 2, 64, 128, 32
    key = jax.random.PRNGKey(0)
    kx, kp, ko = jax.random.split(key, 3)

    x = jax.random.normal(kx, (B, S, dim), jnp.float32)
    params = init_params(kp, dim, head_dim)

    # Correctness check with a non-zero out_proj so the whole pipeline is
    # exercised numerically (the real module zero-inits out_proj -> output 0).
    params_test = dict(params)
    params_test["out_w"] = 0.05 * jax.random.normal(ko, (dim, dim), jnp.float32)
    y_ref = reference_forward(x, params_test, head_dim)

    # f32 MXU feeds: tight check.
    y_f32 = self_attention_forward(x, params_test, head_dim, mxu_dtype=jnp.float32)
    err32 = float(jnp.max(jnp.abs(y_f32 - y_ref)))
    assert jnp.allclose(y_f32, y_ref, atol=2e-2, rtol=2e-2), f"f32 max abs err {err32}"

    # bf16 MXU feeds (default / perf path): looser check.
    y_bf = self_attention_forward(x, params_test, head_dim, mxu_dtype=jnp.bfloat16)
    errbf = float(jnp.max(jnp.abs(y_bf - y_ref)))
    assert jnp.allclose(y_bf, y_ref, atol=1e-1, rtol=1e-1), f"bf16 max abs err {errbf}"

    # Faithful module forward (zero-initialized out_proj, as in __init__).
    y = self_attention_forward(x, params, head_dim)
    jax.block_until_ready(y)
    print("KERNEL_OK")
</pallas_src>

<mosaic_0001>
module attributes {stable_mosaic.version = 11 : i64} {
  func.func @_ln_qkv_rope_kernel(%arg0: i32, %arg1: i32, %arg2: memref<1x32x128xf32, #tpu.memory_space<vmem>>, %arg3: memref<1x128xf32, #tpu.memory_space<vmem>>, %arg4: memref<1x128xf32, #tpu.memory_space<vmem>>, %arg5: memref<128x384xf32, #tpu.memory_space<vmem>>, %arg6: memref<32x128xf32, #tpu.memory_space<vmem>>, %arg7: memref<32x128xf32, #tpu.memory_space<vmem>>, %arg8: memref<32x128xf32, #tpu.memory_space<vmem>>, %arg9: memref<1x32x128xf32, #tpu.memory_space<vmem>>, %arg10: memref<1x32x128xf32, #tpu.memory_space<vmem>>, %arg11: memref<1x32x128xf32, #tpu.memory_space<vmem>>) attributes {dimension_semantics = [#tpu.dimension_semantics<parallel>, #tpu.dimension_semantics<parallel>], iteration_bounds = array<i64: 2, 2>, scalar_prefetch = 0 : i64, scratch_operands = 0 : i64, tpu.core_type = #tpu.core_type<tc>, window_params = [{transform_indices = @transform_0, window_bounds = array<i64: 1, 32, 128>}, {pipeline_mode = #tpu.pipeline_mode<synchronous>, transform_indices = @transform_1, window_bounds = array<i64: 1, 128>}, {pipeline_mode = #tpu.pipeline_mode<synchronous>, transform_indices = @transform_2, window_bounds = array<i64: 1, 128>}, {pipeline_mode = #tpu.pipeline_mode<synchronous>, transform_indices = @transform_3, window_bounds = array<i64: 128, 384>}, {transform_indices = @transform_4, window_bounds = array<i64: 32, 128>}, {transform_indices = @transform_5, window_bounds = array<i64: 32, 128>}, {transform_indices = @transform_6, window_bounds = array<i64: 32, 128>}, {transform_indices = @transform_7, window_bounds = array<i64: 1, 32, 128>}, {transform_indices = @transform_8, window_bounds = array<i64: 1, 32, 128>}, {transform_indices = @transform_9, window_bounds = array<i64: 1, 32, 128>}]} {
    %c0 = arith.constant 0 : index
    %c0_0 = arith.constant 0 : index
    %c0_1 = arith.constant 0 : index
    %0 = vector.load %arg2[%c0, %c0_0, %c0_1] : memref<1x32x128xf32, #tpu.memory_space<vmem>>, vector<1x32x128xf32>
    %1 = vector.shape_cast %0 : vector<1x32x128xf32> to vector<32x128xf32>
    %cst = arith.constant dense<0.000000e+00> : vector<32xf32>
    %2 = vector.multi_reduction <add>, %1, %cst [1] : vector<32x128xf32> to vector<32xf32>
    %3 = vector.shape_cast %2 : vector<32xf32> to vector<32x1xf32>
    %cst_2 = arith.constant 1.280000e+02 : f32
    %4 = vector.broadcast %cst_2 : f32 to vector<32x1xf32>
    %5 = arith.divf %3, %4 : vector<32x1xf32>
    %6 = vector.broadcast %5 : vector<32x1xf32> to vector<32x128xf32>
    %7 = arith.subf %1, %6 : vector<32x128xf32>
    %8 = arith.mulf %7, %7 : vector<32x128xf32>
    %cst_3 = arith.constant dense<0.000000e+00> : vector<32xf32>
    %9 = vector.multi_reduction <add>, %8, %cst_3 [1] : vector<32x128xf32> to vector<32xf32>
    %10 = vector.shape_cast %9 : vector<32xf32> to vector<32x1xf32>
    %cst_4 = arith.constant 1.280000e+02 : f32
    %11 = vector.broadcast %cst_4 : f32 to vector<32x1xf32>
    %12 = arith.divf %10, %11 : vector<32x1xf32>
    %cst_5 = arith.constant 9.99999974E-6 : f32
    %13 = vector.broadcast %cst_5 : f32 to vector<32x1xf32>
    %14 = arith.addf %12, %13 : vector<32x1xf32>
    %15 = math.rsqrt %14 : vector<32x1xf32>
    %16 = vector.broadcast %15 : vector<32x1xf32> to vector<32x128xf32>
    %17 = arith.mulf %7, %16 : vector<32x128xf32>
    %c0_6 = arith.constant 0 : index
    %c0_7 = arith.constant 0 : index
    %18 = vector.load %arg3[%c0_6, %c0_7] : memref<1x128xf32, #tpu.memory_space<vmem>>, vector<1x128xf32>
    %19 = vector.broadcast %18 : vector<1x128xf32> to vector<32x128xf32>
    %20 = arith.mulf %17, %19 : vector<32x128xf32>
    %c0_8 = arith.constant 0 : index
    %c0_9 = arith.constant 0 : index
    %21 = vector.load %arg4[%c0_8, %c0_9] : memref<1x128xf32, #tpu.memory_space<vmem>>, vector<1x128xf32>
    %22 = vector.broadcast %21 : vector<1x128xf32> to vector<32x128xf32>
    %23 = arith.addf %20, %22 : vector<32x128xf32>
    %c0_10 = arith.constant 0 : index
    %c0_11 = arith.constant 0 : index
    %24 = vector.load %arg5[%c0_10, %c0_11] : memref<128x384xf32, #tpu.memory_space<vmem>>, vector<128x384xf32>
    %cst_12 = arith.constant dense<0.000000e+00> : vector<32x384xf32>
    %25 = tpu.matmul %23, %24, %cst_12 {dimension_numbers = #tpu.dot_dimension_numbers<[1], [0], [0], [1], [0, 0, 1, 1], [], []>} : vector<32x128xf32>, vector<128x384xf32>, vector<32x384xf32> -> vector<32x384xf32>
    %26 = vector.extract_strided_slice %25 {offsets = [0, 0], sizes = [32, 128], strides = [1, 1]} : vector<32x384xf32> to vector<32x128xf32>
    %cst_13 = arith.constant 0.176776692 : f32
    %27 = vector.broadcast %cst_13 : f32 to vector<32x128xf32>
    %28 = arith.mulf %26, %27 : vector<32x128xf32>
    %29 = vector.extract_strided_slice %25 {offsets = [0, 128], sizes = [32, 128], strides = [1, 1]} : vector<32x384xf32> to vector<32x128xf32>
    %30 = vector.extract_strided_slice %25 {offsets = [0, 256], sizes = [32, 128], strides = [1, 1]} : vector<32x384xf32> to vector<32x128xf32>
    %c0_14 = arith.constant 0 : index
    %c0_15 = arith.constant 0 : index
    %31 = vector.load %arg6[%c0_14, %c0_15] : memref<32x128xf32, #tpu.memory_space<vmem>>, vector<32x128xf32>
    %c0_16 = arith.constant 0 : index
    %c0_17 = arith.constant 0 : index
    %32 = vector.load %arg7[%c0_16, %c0_17] : memref<32x128xf32, #tpu.memory_space<vmem>>, vector<32x128xf32>
    %c0_18 = arith.constant 0 : index
    %c0_19 = arith.constant 0 : index
    %33 = vector.load %arg8[%c0_18, %c0_19] : memref<32x128xf32, #tpu.memory_space<vmem>>, vector<32x128xf32>
    %34 = arith.mulf %28, %31 : vector<32x128xf32>
    %c120_i32 = arith.constant 120 : i32
    %35 = tpu.dynamic_rotate %28 by %c120_i32 dim 1 : vector<32x128xf32>, i32 -> vector<32x128xf32>
    %36 = arith.mulf %35, %32 : vector<32x128xf32>
    %37 = arith.addf %34, %36 : vector<32x128xf32>
    %c8_i32 = arith.constant 8 : i32
    %38 = tpu.dynamic_rotate %28 by %c8_i32 dim 1 : vector<32x128xf32>, i32 -> vector<32x128xf32>
    %39 = arith.mulf %38, %33 : vector<32x128xf32>
    %40 = arith.addf %37, %39 : vector<32x128xf32>
    %c0_20 = arith.constant 0 : index
    %c0_21 = arith.constant 0 : index
    %c0_22 = arith.constant 0 : index
    %41 = vector.load %arg9[%c0_20, %c0_21, %c0_22] : memref<1x32x128xf32, #tpu.memory_space<vmem>>, vector<1x32x128xf32>
    %42 = vector.shape_cast %41 : vector<1x32x128xf32> to vector<32x128xf32>
    %43 = vector.shape_cast %40 : vector<32x128xf32> to vector<1x32x128xf32>
    tpu.vector_store %arg9[%c0_20, %c0_21, %c0_22], %43 {strides = array<i32>} : memref<1x32x128xf32, #tpu.memory_space<vmem>>, vector<1x32x128xf32>,
    %44 = arith.mulf %29, %31 : vector<32x128xf32>
    %c120_i32_23 = arith.constant 120 : i32
    %45 = tpu.dynamic_rotate %29 by %c120_i32_23 dim 1 : vector<32x128xf32>, i32 -> vector<32x128xf32>
    %46 = arith.mulf %45, %32 : vector<32x128xf32>
    %47 = arith.addf %44, %46 : vector<32x128xf32>
    %c8_i32_24 = arith.constant 8 : i32
    %48 = tpu.dynamic_rotate %29 by %c8_i32_24 dim 1 : vector<32x128xf32>, i32 -> vector<32x128xf32>
    %49 = arith.mulf %48, %33 : vector<32x128xf32>
    %50 = arith.addf %47, %49 : vector<32x128xf32>
    %c0_25 = arith.constant 0 : index
    %c0_26 = arith.constant 0 : index
    %c0_27 = arith.constant 0 : index
    %51 = vector.load %arg10[%c0_25, %c0_26, %c0_27] : memref<1x32x128xf32, #tpu.memory_space<vmem>>, vector<1x32x128xf32>
    %52 = vector.shape_cast %51 : vector<1x32x128xf32> to vector<32x128xf32>
    %53 = vector.shape_cast %50 : vector<32x128xf32> to vector<1x32x128xf32>
    tpu.vector_store %arg10[%c0_25, %c0_26, %c0_27], %53 {strides = array<i32>} : memref<1x32x128xf32, #tpu.memory_space<vmem>>, vector<1x32x128xf32>,
    %c0_28 = arith.constant 0 : index
    %c0_29 = arith.constant 0 : index
    %c0_30 = arith.constant 0 : index
    %54 = vector.load %arg11[%c0_28, %c0_29, %c0_30] : memref<1x32x128xf32, #tpu.memory_space<vmem>>, vector<1x32x128xf32>
    %55 = vector.shape_cast %54 : vector<1x32x128xf32> to vector<32x128xf32>
    %56 = vector.shape_cast %30 : vector<32x128xf32> to vector<1x32x128xf32>
    tpu.vector_store %arg11[%c0_28, %c0_29, %c0_30], %56 {strides = array<i32>} : memref<1x32x128xf32, #tpu.memory_space<vmem>>, vector<1x32x128xf32>,
    return
  }
  func.func @transform_0(%arg0: i32, %arg1: i32) -> (i32, i32, i32) {
    %c0_i32 = arith.constant 0 : i32
    %c0_i32_0 = arith.constant 0 : i32
    return %arg0, %arg1, %c0_i32 : i32, i32, i32
  }
  func.func @transform_1(%arg0: i32, %arg1: i32) -> (i32, i32) {
    %c0_i32 = arith.constant 0 : i32
    %c0_i32_0 = arith.constant 0 : i32
    %c0_i32_1 = arith.constant 0 : i32
    return %c0_i32, %c0_i32_0 : i32, i32
  }
  func.func @transform_2(%arg0: i32, %arg1: i32) -> (i32, i32) {
    %c0_i32 = arith.constant 0 : i32
    %c0_i32_0 = arith.constant 0 : i32
    %c0_i32_1 = arith.constant 0 : i32
    return %c0_i32, %c0_i32_0 : i32, i32
  }
  func.func @transform_3(%arg0: i32, %arg1: i32) -> (i32, i32) {
    %c0_i32 = arith.constant 0 : i32
    %c0_i32_0 = arith.constant 0 : i32
    %c0_i32_1 = arith.constant 0 : i32
    return %c0_i32, %c0_i32_0 : i32, i32
  }
  func.func @transform_4(%arg0: i32, %arg1: i32) -> (i32, i32) {
    %c0_i32 = arith.constant 0 : i32
    %c0_i32_0 = arith.constant 0 : i32
    return %arg1, %c0_i32 : i32, i32
  }
  func.func @transform_5(%arg0: i32, %arg1: i32) -> (i32, i32) {
    %c0_i32 = arith.constant 0 : i32
    %c0_i32_0 = arith.constant 0 : i32
    return %arg1, %c0_i32 : i32, i32
  }
  func.func @transform_6(%arg0: i32, %arg1: i32) -> (i32, i32) {
    %c0_i32 = arith.constant 0 : i32
    %c0_i32_0 = arith.constant 0 : i32
    return %arg1, %c0_i32 : i32, i32
  }
  func.func @transform_7(%arg0: i32, %arg1: i32) -> (i32, i32, i32) {
    %c0_i32 = arith.constant 0 : i32
    %c0_i32_0 = arith.constant 0 : i32
    return %arg0, %arg1, %c0_i32 : i32, i32, i32
  }
  func.func @transform_8(%arg0: i32, %arg1: i32) -> (i32, i32, i32) {
    %c0_i32 = arith.constant 0 : i32
    %c0_i32_0 = arith.constant 0 : i32
    return %arg0, %arg1, %c0_i32 : i32, i32, i32
  }
  func.func @transform_9(%arg0: i32, %arg1: i32) -> (i32, i32, i32) {
    %c0_i32 = arith.constant 0 : i32
    %c0_i32_0 = arith.constant 0 : i32
    return %arg0, %arg1, %c0_i32 : i32, i32, i32
  }
}

</mosaic_0001>

<bundles_post_ra>
// kernel: tpu_custom_call.1
= control target key start
LH: loop header
LB: loop body
LE: loop exit
PB: predicated region body
PF: predicated region fallthrough
CT: control target
= control target key end

     0   :  { %s2366_s0 = inlined_call_operand.hbm [shape: f32[2,64,128], index: 0, kind: input, shape index: {}]   ;;  %s2367_s1 = inlined_call_operand.vmem [shape: f32[1,128], index: 1, kind: input, shape index: {}]   ;;  %s2368_s2 = inlined_call_operand.vmem [shape: f32[1,128], index: 2, kind: input, shape index: {}]   ;;  %s2369_s3 = inlined_call_operand.hbm [shape: f32[128,384], index: 3, kind: input, shape index: {}]   ;;  %s2370_s4 = inlined_call_operand.hbm [shape: f32[64,128], index: 4, kind: input, shape index: {}]   ;;  %s2371_s5 = inlined_call_operand.hbm [shape: f32[64,128], index: 5, kind: input, shape index: {}]   ;;  %s2372_s6 = inlined_call_operand.hbm [shape: f32[64,128], index: 6, kind: input, shape index: {}]   ;;  %s2373_s7 = inlined_call_operand.hbm [shape: f32[2,64,128], index: 7, kind: output, shape index: {0}]   ;;  %s2374_s8 = inlined_call_operand.hbm [shape: f32[2,64,128], index: 8, kind: output, shape index: {1}]   ;;  %s2375_s9 = inlined_call_operand.hbm [shape: f32[2,64,128], index: 9, kind: output, shape index: {2}]  }
   0x1   :  { %2394 = sst [smem:[#allocation26_spill]] %s2366_s0 }
   0x2   :  { %2395 = sst [smem:[#allocation27_spill]] %s2367_s1 }
   0x3   :  { %2396 = sst [smem:[#allocation28_spill]] %s2368_s2 }
   0x4   :  { %2397 = sst [smem:[#allocation29_spill]] %s2369_s3 }
   0x5   :  { %2398 = sst [smem:[#allocation30_spill]] %s2370_s4 }
   0x6   :  { %2399 = sst [smem:[#allocation31_spill]] %s2371_s5 }
   0x7   :  { %2400 = sst [smem:[#allocation32_spill]] %s2372_s6 }
   0x8   :  { %2401 = sst [smem:[#allocation33_spill]] %s2373_s7 }
   0x9   :  { %2402 = sst [smem:[#allocation34_spill]] %s2374_s8 }
   0xa   :  { %2403 = sst [smem:[#allocation35_spill]] %s2375_s9 }
   0xb   :  { %15 = vsyncpa [#allocation3], 0 }
   0xc   :  { %17 = vsyncpa [#allocation3 + $0x1], 0 }
   0xd   :  { %18 = vsyncpa [#allocation6], 0 }
   0xe   :  { %19 = vsyncpa [#allocation4], 0 }
   0xf   :  { %21 = vsyncpa [#allocation4 + $0x1], 0 }
  0x10   :  { %22 = vsyncpa [#allocation12], 0 }
  0x11   :  { %24 = vsyncpa [#allocation12 + $0x1], 0  ;;  %s1854_s30 = smov 0   ;;  %s1856_s10 = smov 0  }
  0x12   :  { %s1858_s11 = smov 0   ;;  %s1860_s12 = smov 0  }
  0x13   :  { %s1862_s13 = smov 0   ;;  %s1864_s14 = smov 0  }
  0x14   :  { %s1866_s15 = smov 0   ;;  %s1868_s16 = smov 0  }
  0x15   :  { %s1870_s17 = smov 0   ;;  %s1872_s18 = smov 0  }
  0x16   :  { %s1874_s19 = smov 0  }
  0x17 LB: > { %2404 = sst [smem:[#allocation19_spill]] %s1770_s15  ;;  %s39_s20 = sadd.s32 1, %s1778_s17  ;;  %s1786_s19 = sphi %s1874_s19, %s30_s19   ;;  %s1782_s18 = sphi %s1872_s18, %s2448_s18   ;;  %s1778_s17 = sphi %s1870_s17, %s2447_s17   ;;  %s1774_s16 = sphi %s1868_s16, %s2446_s16   ;;  %s1770_s15 = sphi %s1866_s15, %s2445_s15   ;;  %s1766_s14 = sphi %s1864_s14, %s2454_s14   ;;  %s1762_s13 = sphi %s1862_s13, %s2453_s13   ;;  %s1758_s12 = sphi %s1860_s12, %s2452_s12   ;;  %s1754_s11 = sphi %s1858_s11, %s2451_s11   ;;  %s1750_s10 = sphi %s1856_s10, %s2450_s10   ;;  %s1746_s30 = sphi %s1854_s30, %s2449_s30  }
  0x18   : > { %2405 = sst [smem:[#allocation20_spill]] %s1774_s16  ;;  %s42_s21 = sadd.s32 1, %s1782_s18 }
  0x19   : > { %2406 = sst [smem:[#allocation21_spill]] %s1778_s17  ;;  %p40_p0 = scmp.ge.s32.totalorder %s39_s20, 2 }
  0x1a   : > { %2407 = sst [smem:[#allocation22_spill]] %s1782_s18  ;;  %s51_s22 = sadd.s32 1, %s1766_s14 }
  0x1b   : > { %p58_p1 = scmp.ne.s32.totalorder %s1766_s14, %s1762_s13  ;;  %p59_p2 = scmp.eq.s32.totalorder %s1786_s19, 0 }
  0x1c   : > { %s2456_s20 = smov (%p40_p0, %s39_s20), 0  ;;  %s2458_s21 = smov (!%p40_p0, %s42_s21), %s1782_s18 }
  0x1d   : > { %2408 = sst [smem:[#allocation23_spill]] %s2456_s20  ;;  %s1920_s23 = ssub.s32 %s1778_s17, %s2456_s20 }
  0x1e   : > { %p1927_p3 = por %p59_p2, %p58_p1  ;;  %p44_p4 = scmp.ge.s32.totalorder %s2458_s21, 2 }
  0x1f   : > { %p138_p5 = scmp.eq.s32.totalorder %s1920_s23, 0  ;;  %p1356_p6 = scmp.lt.s32.totalorder %s1786_s19, 4 }
  0x20   : > { %s2460_s21 = smov (%p44_p4, %s2458_s21), 0  ;;  %s332_s25 = sand.u32 1, %s1786_s19  }
  0x21   : > { %2410 = sst [smem:[#allocation24_spill]] %s2460_s21  ;;  %s334_s26 = sand.u32 1, %s1766_s14  }
  0x22   : > { %s46_s27 = ssub.s32 %s1782_s18, %s2460_s21  ;;  %s1211_s29 = sshll.u32 %s334_s26, 5 }
  0x23   : > { %s48_s28 = sor.u32 %s1920_s23, %s46_s27  ;;  %s1212_s20 = sshll.u32 %s1778_s17, 2 }
  0x24   : > { %p49_p7 = scmp.eq.s32.totalorder %s48_s28, 0  ;;  %s1213_s7 = sshll.u32 %s1782_s18, 3 }
  0x25   : > { %s342_s8 = sadd.s32 %s1213_s7, %s1212_s20  ;;  %s336_s16 = scalar_lea.vmem [#allocation2], %s1211_s29 }
  0x26   : > { %s1943_s9 = scalar_select %p49_p7, %s1766_s14, %s51_s22  }
  0x27   : > { %s345_s15 = sshll.u32 %s336_s16, 4  ;;  %s1214_s2 = sshll.u32 %s342_s8, 7  ;;  %s346_s15 = int_to_ptr.vmem [resolvable:$true] %s345_s15 }
  0x28   : > { %2411 = sst [smem:[#allocation25_spill]] %s1943_s9  ;;  %p1952_p8 = pnand %p1356_p6, %p1927_p3 }
  0x29   : > { %s2412_s0 = sld [smem:[#allocation26_spill]]  ;;  %s1956_s26 = scalar_lea.sflag [#allocation3], %s332_s25 }
  0x2a   : > { %p1466_p9 = pneg %p1952_p8  ;;  %s1477_s7 = scalar_lea.vmem %s346_s15, 512 }
  0x2b   : > { %p1478_p10 = scmp.ne.s32.totalorder %s346_s15, %s1477_s7  ;;  %s1788_s8 = smov [#allocation2]  }
  0x2c   : > { %s1482_s16 = sshll.u32 %s1788_s8, 4  ;;  %s1483_s16 = int_to_ptr.vmem [resolvable:$false] %s1482_s16 }
  0x2d   : > { %p1480_p11 = pnand %p1478_p10, %p1466_p9  ;;  %s1484_s1 = scalar_lea.vmem %s1483_s16, 1024 }
  0x2e   : > { %p1485_p13 = scmp.lt.s32.totalorder %s346_s15, %s1483_s16  ;;  %p1486_p0 = scmp.lt.s32.totalorder %s1484_s1, %s1477_s7 }
  0x2f   : > { %s344_s6 = scalar_lea.hbm %s2412_s0, %s1214_s2  ;;  %p1481_p12 = pneg %p1480_p11 }
  0x30   : > { %p1487_p4 = por %p1486_p0, %p1485_p13 }
  0x32   : > { %p1488_p3 = pnand %p1487_p4, %p1481_p12 }
  0x34   : > { %1491 = shalt.err (!%p1488_p3)
}
  0x35   : > { %s2384_s2 = smov 128   ;;  %s2385_s3 = smov 8  }
  0x36   : > { %1335 = dma.hbm_to_vmem [thread:$0]  (!%p1952_p8), %s344_s6, 512, %s346_s15, %s1956_s26, %s2384_s2, %s2384_s2, %s2385_s3  }
  0x37   : > { %s1967_s20 = sshll.u32 %s1778_s17, 9  ;;  %s140_s22 = sadd.s32 1, %s1754_s11 }
  0x38   : > { %p147_p7 = scmp.ne.s32.totalorder %s1754_s11, %s1750_s10  ;;  %s357_s25 = sand.u32 1, %s1754_s11  }
  0x39   : > { %s1975_s24 = scalar_select %p138_p5, %s1754_s11, %s140_s22  }
  0x3a   : > { %p149_p9 = por %p147_p7, %p59_p2  ;;  %s1980_s27 = sshll.u32 %s357_s25, 5 }
  0x3b   : > { %s2414_s4 = sld [smem:[#allocation30_spill]]  ;;  %s359_s15 = scalar_lea.vmem [#allocation7], %s1980_s27 }
  0x3c   : > { %p1988_p8 = pnand %p1356_p6, %p149_p9  ;;  %s366_s23 = sshll.u32 %s359_s15, 4  ;;  %s367_s23 = int_to_ptr.vmem [resolvable:$true] %s366_s23 }
  0x3d   : > { %s1505_s7 = scalar_lea.vmem %s367_s23, 512  ;;  %s1791_s8 = smov [#allocation7]  }
  0x3e   : > { %p2382_p2 = pneg %p1988_p8  ;;  %p1506_p5 = scmp.ne.s32.totalorder %s367_s23, %s1505_s7 }
  0x3f   : > { %s1510_s16 = sshll.u32 %s1791_s8, 4  ;;  %s1511_s16 = int_to_ptr.vmem [resolvable:$false] %s1510_s16 }
  0x40   : > { %p1508_p10 = pnand %p1506_p5, %p2382_p2  ;;  %s1512_s1 = scalar_lea.vmem %s1511_s16, 1024 }
  0x41   : > { %s365_s21 = scalar_lea.hbm %s2414_s4, %s1967_s20  ;;  %p1513_p6 = scmp.lt.s32.totalorder %s367_s23, %s1511_s16 }
  0x42   : > { %p1509_p11 = pneg %p1508_p10  ;;  %p1514_p12 = scmp.lt.s32.totalorder %s1512_s1, %s1505_s7 }
  0x44   : > { %p1515_p13 = por %p1514_p12, %p1513_p6 }
  0x46   : > { %p1516_p0 = pnand %p1515_p13, %p1509_p11 }
  0x48   : > { %1519 = shalt.err (!%p1516_p0)
}
  0x49   : > { %1338 = dma.hbm_to_vmem [thread:$0]  (!%p1988_p8), %s365_s21, 512, %s367_s23, %s1956_s26, %s2384_s2, %s2384_s2, %s2385_s3  }
  0x4a   : > { %s2416_s5 = sld [smem:[#allocation31_spill]]  ;;  %s380_s29 = scalar_lea.vmem [#allocation8], %s1980_s27 }
  0x4b   : > { %s387_s15 = sshll.u32 %s380_s29, 4  ;;  %s1792_s8 = smov [#allocation8]   ;;  %s388_s15 = int_to_ptr.vmem [resolvable:$true] %s387_s15 }
  0x4c   : > { %s1533_s7 = scalar_lea.vmem %s388_s15, 512  ;;  %s1538_s16 = sshll.u32 %s1792_s8, 4  ;;  %s1539_s16 = int_to_ptr.vmem [resolvable:$false] %s1538_s16 }
  0x4d   : > { %p1534_p4 = scmp.ne.s32.totalorder %s388_s15, %s1533_s7  ;;  %s1540_s1 = scalar_lea.vmem %s1539_s16, 1024 }
  0x4e   : > { %p1541_p9 = scmp.lt.s32.totalorder %s388_s15, %s1539_s16  ;;  %p1542_p5 = scmp.lt.s32.totalorder %s1540_s1, %s1533_s7 }
  0x4f   : > { %p1536_p3 = pnand %p1534_p4, %p2382_p2 }
  0x50   : > { %s386_s28 = scalar_lea.hbm %s2416_s5, %s1967_s20  ;;  %p1543_p10 = por %p1542_p5, %p1541_p9 }
  0x51   : > { %p1537_p7 = pneg %p1536_p3 }
  0x53   : > { %p1544_p11 = pnand %p1543_p10, %p1537_p7 }
  0x55   : > { %1547 = shalt.err (!%p1544_p11)
}
  0x56   : > { %1341 = dma.hbm_to_vmem [thread:$0]  (!%p1988_p8), %s386_s28, 512, %s388_s15, %s1956_s26, %s2384_s2, %s2384_s2, %s2385_s3  }
  0x57   : > { %s2019_s21 = sadd.s32 4294967295, %s1786_s19   ;;  %s2383_s23 = sadd.s32 4294967294, %s1786_s19  }
  0x58   : > { %p64_p6 = scmp.ne.s32.totalorder %s1762_s13, %s1758_s12  ;;  %p2386_p12 = scmp.eq.s32.totalorder %s2019_s21, 0 }
  0x59   : > { %p153_p13 = scmp.ne.s32.totalorder %s1750_s10, %s1746_s30  ;;  %p231_p0 = scmp.eq.s32.totalorder %s2019_s21, 3 }
  0x5a   : > { %p237_p4 = scmp.eq.s32.totalorder %s2383_s23, 3  ;;  %p2032_p3 = por %p2386_p12, %p64_p6 }
  0x5b   : > { %p2038_p7 = por %p153_p13, %p2386_p12  ;;  %p2045_p9 = por %p231_p0, %p58_p1 }
  0x5c   : > { %p2049_p5 = por %p237_p4, %p64_p6  ;;  %p1208_p10 = scmp.ge.s32.totalorder %s1786_s19, 1 }
  0x5d   : > { %p300_p11 = scmp.lt.s32.totalorder %s1786_s19, 5  ;;  %s1793_s15 = smov [#allocation5]  }
  0x5e   : > { %s2420_s30 = scalar_select %p2049_p5, 1, 0 }
  0x5f   : > { %p2055_p2 = pnand %p1208_p10, %p300_p11  ;;  %s318_s7 = sshll.u32 %s1793_s15, 4  ;;  %s319_s7 = int_to_ptr.vmem [resolvable:$true] %s318_s7 }
  0x60   : > { %s401_s16 = scalar_lea.vmem [#allocation9], %s1980_s27  ;;  %s2423_s3 = sld [smem:[#allocation32_spill]] }
  0x61   : > { %p1328_p13 = pneg %p2055_p2  ;;  %s408_s1 = sshll.u32 %s401_s16, 4  ;;  %s2072_s1 = int_to_ptr.vmem [resolvable:$true] %s408_s1 }
  0x62   : > { %s1559_s15 = scalar_lea.vmem %s319_s7, 6144  ;;  %p1567_p11 = scmp.lt.s32.totalorder %s319_s7, %s319_s7 }
  0x63   : > { %p2063_p1 = pnand %p1328_p13, %p2386_p12  ;;  %p1560_p0 = scmp.ne.s32.totalorder %s319_s7, %s1559_s15 }
  0x64   : > { %p1568_p13 = scmp.lt.s32.totalorder %s1559_s15, %s1559_s15 }
  0x65   : > { %p1550_p6 = pneg %p2063_p1 }
  0x66   : > { %p1569_p12 = por %p1568_p13, %p1567_p11 }
  0x67   : > { %p1562_p4 = pnand %p1560_p0, %p1550_p6 }
  0x69   : > { %p1563_p10 = pneg %p1562_p4 }
  0x6b   : > { %p1570_p5 = pnand %p1569_p12, %p1563_p10 }
  0x6d   : > { %1573 = shalt.err (!%p1570_p5)
}
  0x6e   : > { %s1794_s4 = smov 384   ;;  %s1795_s2 = smov 24  }
  0x6f   : > { %s2424_s16 = sld [smem:[#allocation29_spill]]  ;;  %s1587_s0 = scalar_lea.vmem %s2072_s1, 512 }
  0x70   : > { %p1588_p6 = scmp.ne.s32.totalorder %s2072_s1, %s1587_s0  ;;  %p2425_p0 = pneg %p1988_p8 }
  0x71   : > { %s1796_s15 = smov [#allocation9]  }
  0x72   : > { %p1590_p4 = pnand %p1588_p6, %p2425_p0  ;;  %s1592_s5 = sshll.u32 %s1796_s15, 4  ;;  %s1593_s5 = int_to_ptr.vmem [resolvable:$false] %s1592_s5 }
  0x73   : > { %s1594_s18 = scalar_lea.vmem %s1593_s5, 1024  ;;  %p1595_p12 = scmp.lt.s32.totalorder %s2072_s1, %s1593_s5 }
  0x74   : > { %p1591_p11 = pneg %p1590_p4  ;;  %p1596_p5 = scmp.lt.s32.totalorder %s1594_s18, %s1587_s0 }
  0x75   : > { %1331 = dma.hbm_to_vmem [thread:$0]  (!%p2063_p1), %s2424_s16, 6144, %s319_s7, [#allocation6], %s1794_s4, %s1794_s4, %s1795_s2  }
  0x76   : > { %p1597_p10 = por %p1596_p5, %p1595_p12 }
  0x78   : > { %p1598_p13 = pnand %p1597_p10, %p1591_p11 }
  0x7a   : > { %1601 = shalt.err (!%p1598_p13)
}
  0x7b   : > { %s2426_s8 = smov 8   ;;  %s2427_s27 = smov 128  }
  0x7c   : > { %s2428_s2 = scalar_lea.hbm %s2423_s3, %s1967_s20  ;;  %420 = sbr.rel (%p2055_p2) target bundleno = 848 (0x350), region = 48 }
  0x7d   : > { %1344 = dma.hbm_to_vmem [thread:$0]  (!%p1988_p8), %s2428_s2, 512, %s2072_s1, %s1956_s26, %s2427_s27, %s2427_s27, %s2426_s8  }
  0x7e   : > { %s2391_s0 = sand.u32 (!%p2055_p2), 1, %s2019_s21   ;;  %s2388_s5 = sand.u32 (!%p2055_p2), 1, %s1762_s13  }
  0x7f   : > { %s2105_s18 = sshll.u32 (!%p2055_p2), %s2388_s5, 5  ;;  %s423_s6 = scalar_lea.sflag (!%p2055_p2), [#allocation3], %s2391_s0 }
  0x80   : > { %s426_s23 = scalar_lea.vmem (!%p2055_p2), [#allocation2], %s2105_s18 }
  0x81   : > { %1725 = dma.done.wait (%p2032_p3), %s423_s6, 512  }
  0x82   : > { %1727 = vsyncadd (%p2032_p3), %s423_s6, 4294966784  ;;  %p2429_p8 = scmp.eq.s32.totalorder %s2019_s21, 0 }
  0x84   : > { %1729 = dma.done.wait (%p2429_p8), [#allocation6], 6144   ;;  %p2430_p2 = pmov %p2429_p8 }
  0x85   : > { %s437_s26 = sand.u32 1, %s1750_s10  }
  0x86   : > { %1731 = vsyncadd (%p2430_p2), [#allocation6], 4294961152  ;;  %s2119_s20 = sshll.u32 %s437_s26, 5 }
  0x87   : > { %s2122_s29 = scalar_lea.vmem [#allocation7], %s2119_s20 }
  0x88   : > { %1733 = dma.done.wait (%p2038_p7), %s423_s6, 1536  }
  0x89   : > { %1735 = vsyncadd (%p2038_p7), %s423_s6, 4294965760  ;;  %v524_v0 = vld [vmem:[%s426_s23] sm:$0xff]  ;;  %v526_v1 = vld [vmem:[%s426_s23 + $0x10] sm:$0xff]  ;;  %s2431_s1 = sld [smem:[#allocation27_spill]]  ;;  %s1798_s27 = smov 120  }
  0x8a   : > { %528 = vadd.xlane.f32.xlu0 %v524_v0  ;;  %532 = vadd.xlane.f32.xlu1 %v526_v1  ;;  %v525_v2 = vld [vmem:[%s426_s23 + $0x8] sm:$0xff]  ;;  %v527_v3 = vld [vmem:[%s426_s23 + $0x18] sm:$0xff]  ;;  %v641_v4 = vld [vmem:[#allocation5 + $0x170] sm:$0xff]  ;;  %s2432_s8 = sld [smem:[#allocation28_spill]]  ;;  %s2156_s4 = scalar_lea.vmem [#allocation13], %s2105_s18 }
  0x8b   : > { %v640_v5 = vld [vmem:[#allocation5 + $0x168] sm:$0xff]  ;;  %v638_v6 = vld [vmem:[#allocation5 + $0x158] sm:$0xff]  ;;  %643 = vmatprep.subr.mxu0 %v641_v4  ;;  %v637_v7 = vld [vmem:[#allocation5 + $0x150] sm:$0xff]  ;;  %s2389_s7 = smov 8   ;;  %s2190_s2 = scalar_lea.vmem [#allocation8], %s2119_s20 }
  0x8c   : > { %v642_v8 = vld [vmem:[#allocation5 + $0x178] sm:$0xff]  ;;  %644 = vmatpush1.msra.mxu0 %v640_v5  ;;  %v635_v9 = vld [vmem:[#allocation5 + $0x140] sm:$0xff]  ;;  %v632_v12 = vld [vmem:[#allocation5 + $0x128] sm:$0xff]  ;;  %s2196_s6 = scalar_lea.vmem [#allocation9], %s2119_s20  ;;  %s2202_s23 = scalar_lea.vmem [#allocation11], %s2105_s18 }
  0x8d   : > { %1272 = vmatprep.subr.mxu1 %v642_v8  ;;  %v639_v10 = vld [vmem:[#allocation5 + $0x160] sm:$0xff]  ;;  %645 = vmatprep.subr.mxu0 %v638_v6  ;;  %v634_v11 = vld [vmem:[#allocation5 + $0x138] sm:$0xff]  ;;  %v629_v30 = vld [vmem:[#allocation5 + $0x110] sm:$0xff]  ;;  %s2207_s26 = scalar_lea.vmem [#allocation10], %s2105_s18  ;;  %s2433_s20 = sld [smem:[#allocation19_spill]] }
  0x8e   : > { %530 = vadd.xlane.f32.xlu0 %v525_v2  ;;  %534 = vadd.xlane.f32.xlu1 %v527_v3  ;;  %v631_v13 = vld [vmem:[#allocation5 + $0x120] sm:$0xff]  ;;  %v636_v31 = vld [vmem:[#allocation5 + $0x148] sm:$0xff]  ;;  %v626_v33 = vld [vmem:[#allocation5 + $0xf8] sm:$0xff]  ;;  %s2434_s22 = sld [smem:[#allocation20_spill]]  ;;  %s979_s16 = sshll.u32 %s2156_s4, 4  ;;  %s2225_s16 = int_to_ptr.vmem [resolvable:$true] %s979_s16 }
  0x8f   : > { %1273 = vmatpush3.msra.mxu1 %v642_v8  ;;  %646 = vmatpush1.msra.mxu0 %v637_v7  ;;  %v628_v32 = vld [vmem:[#allocation5 + $0x108] sm:$0xff]  ;;  %v633_v34 = vld [vmem:[#allocation5 + $0x130] sm:$0xff]  ;;  %v623_v36 = vld [vmem:[#allocation5 + $0xe0] sm:$0xff]  ;;  %s961_s15 = sshll.u32 %s2202_s23, 4  ;;  %s2438_s0 = sld [smem:[#allocation33_spill]]  ;;  %s2228_s15 = int_to_ptr.vmem [resolvable:$true] %s961_s15 }
  0x90   : > { %1274 = vmatprep.subr.mxu1 %v639_v10  ;;  %647 = vmatprep.subr.mxu0 %v635_v9  ;;  %v625_v35 = vld [vmem:[#allocation5 + $0xf0] sm:$0xff]  ;;  %v630_v37 = vld [vmem:[#allocation5 + $0x118] sm:$0xff]  ;;  %v620_v39 = vld [vmem:[#allocation5 + $0xc8] sm:$0xff]  ;;  %s1602_s17 = scalar_lea.vmem %s2228_s15, 512  ;;  %s1800_s9 = smov [#allocation11]  }
  0x91   : > { %1275 = vmatpush3.msra.mxu1 %v639_v10  ;;  %648 = vmatpush1.msra.mxu0 %v634_v11  ;;  %v622_v38 = vld [vmem:[#allocation5 + $0xd8] sm:$0xff]  ;;  %v627_v40 = vld [vmem:[#allocation5 + $0x100] sm:$0xff]  ;;  %v617_v42 = vld [vmem:[#allocation5 + $0xb0] sm:$0xff]  ;;  %p1603_p3 = scmp.ne.s32.totalorder %s2228_s15, %s1602_s17 }
  0x92   : > { %649 = vmatprep.subr.mxu0 %v632_v12  ;;  %1276 = vmatprep.subr.mxu1 %v636_v31  ;;  %v619_v41 = vld [vmem:[#allocation5 + $0xc0] sm:$0xff]  ;;  %v624_v43 = vld [vmem:[#allocation5 + $0xe8] sm:$0xff]  ;;  %v614_v45 = vld [vmem:[#allocation5 + $0x98] sm:$0xff] }
  0x93   : > { %650 = vmatpush1.msra.mxu0 %v631_v13  ;;  %1277 = vmatpush3.msra.mxu1 %v636_v31  ;;  %v616_v44 = vld [vmem:[#allocation5 + $0xa8] sm:$0xff]  ;;  %v621_v46 = vld [vmem:[#allocation5 + $0xd0] sm:$0xff]  ;;  %v611_v48 = vld [vmem:[#allocation5 + $0x80] sm:$0xff]  ;;  %s1238_s18 = sshll.u32 %s2433_s20, 2  ;;  %p1604_p7 = pnand %p1603_p3, %p2045_p9 }
  0x94   : > { %651 = vmatprep.subr.mxu0 %v629_v30  ;;  %1278 = vmatprep.subr.mxu1 %v633_v34  ;;  %v613_v47 = vld [vmem:[#allocation5 + $0x90] sm:$0xff]  ;;  %v618_v49 = vld [vmem:[#allocation5 + $0xb8] sm:$0xff]  ;;  %v608_v51 = vld [vmem:[#allocation5 + $0x68] sm:$0xff]  ;;  %s1239_s25 = sshll.u32 %s2434_s22, 3  ;;  %s1606_s20 = sshll.u32 %s1800_s9, 4  ;;  %s1607_s20 = int_to_ptr.vmem [resolvable:$false] %s1606_s20 }
  0x95   : > { %652 = vmatpush1.msra.mxu0 %v628_v32  ;;  %1279 = vmatpush3.msra.mxu1 %v633_v34  ;;  %v610_v50 = vld [vmem:[#allocation5 + $0x78] sm:$0xff]  ;;  %v615_v52 = vld [vmem:[#allocation5 + $0xa0] sm:$0xff]  ;;  %v605_v54 = vld [vmem:[#allocation5 + $0x50] sm:$0xff]  ;;  %p1605_p1 = pneg %p1604_p7  ;;  %s1608_s22 = scalar_lea.vmem %s1607_s20, 1024 }
  0x96   : > { %653 = vmatprep.subr.mxu0 %v626_v33  ;;  %1280 = vmatprep.subr.mxu1 %v630_v37  ;;  %v607_v53 = vld [vmem:[#allocation5 + $0x60] sm:$0xff]  ;;  %v612_v55 = vld [vmem:[#allocation5 + $0x88] sm:$0xff]  ;;  %v602_v57 = vld [vmem:[#allocation5 + $0x38] sm:$0xff]  ;;  %p1609_p6 = scmp.lt.s32.totalorder %s2228_s15, %s1607_s20  ;;  %p1610_p0 = scmp.lt.s32.totalorder %s1608_s22, %s1602_s17 }
  0x97   : > { %654 = vmatpush1.msra.mxu0 %v625_v35  ;;  %1281 = vmatpush3.msra.mxu1 %v630_v37  ;;  %v604_v56 = vld [vmem:[#allocation5 + $0x48] sm:$0xff]  ;;  %v609_v58 = vld [vmem:[#allocation5 + $0x70] sm:$0xff]  ;;  %v599_v60 = vld [vmem:[#allocation5 + $0x20] sm:$0xff] }
  0x98   : > { %655 = vmatprep.subr.mxu0 %v623_v36  ;;  %1282 = vmatprep.subr.mxu1 %v627_v40  ;;  %v601_v59 = vld [vmem:[#allocation5 + $0x30] sm:$0xff]  ;;  %v606_v61 = vld [vmem:[#allocation5 + $0x58] sm:$0xff]  ;;  %v596_v63 = vld [vmem:[#allocation5 + $0x8] sm:$0xff]  ;;  %p1611_p4 = por %p1610_p0, %p1609_p6 }
  0x99   : > { %656 = vmatpush1.msra.mxu0 %v622_v38  ;;  %1283 = vmatpush3.msra.mxu1 %v627_v40  ;;  %v598_v62 = vld [vmem:[#allocation5 + $0x18] sm:$0xff]  ;;  %v597_v4 = vld [vmem:[#allocation5 + $0x10] sm:$0xff] }
  0x9a   : > { %657 = vmatprep.subr.mxu0 %v620_v39  ;;  %1284 = vmatprep.subr.mxu1 %v624_v43  ;;  %p1612_p11 = pnand %p1611_p4, %p1605_p1 }
  0x9b   : > { %658 = vmatpush1.msra.mxu0 %v619_v41  ;;  %1285 = vmatpush3.msra.mxu1 %v624_v43 }
  0x9c   : > { %659 = vmatprep.subr.mxu0 %v617_v42  ;;  %1286 = vmatprep.subr.mxu1 %v621_v46 }
  0x9d   : > { %660 = vmatpush1.msra.mxu0 %v616_v44  ;;  %1287 = vmatpush3.msra.mxu1 %v621_v46 }
  0x9e   : > { %661 = vmatprep.subr.mxu0 %v614_v45  ;;  %1288 = vmatprep.subr.mxu1 %v618_v49 }
  0x9f   : > { %662 = vmatpush1.msra.mxu0 %v613_v47  ;;  %1289 = vmatpush3.msra.mxu1 %v618_v49 }
  0xa0   : > { %663 = vmatprep.subr.mxu0 %v611_v48  ;;  %1290 = vmatprep.subr.mxu1 %v615_v52 }
  0xa1   : > { %664 = vmatpush1.msra.mxu0 %v610_v50  ;;  %1291 = vmatpush3.msra.mxu1 %v615_v52  ;;  %v825_v52 = vld [vmem:[%s2190_s2] sm:$0xff] }
  0xa2   : > { %665 = vmatprep.subr.mxu0 %v608_v51  ;;  %1292 = vmatprep.subr.mxu1 %v612_v55 }
  0xa3   : > { %666 = vmatpush1.msra.mxu0 %v607_v53  ;;  %1293 = vmatpush3.msra.mxu1 %v612_v55  ;;  %v821_v53 = vld [vmem:[%s2122_s29] sm:$0xff] }
  0xa4   : > { %667 = vmatprep.subr.mxu0 %v605_v54  ;;  %1294 = vmatprep.subr.mxu1 %v609_v58 }
  0xa5   : > { %668 = vmatpush1.msra.mxu0 %v604_v56  ;;  %1295 = vmatpush3.msra.mxu1 %v609_v58  ;;  %v829_v58 = vld [vmem:[%s2196_s6] sm:$0xff] }
  0xa6   : > { %669 = vmatprep.subr.mxu0 %v602_v57  ;;  %1296 = vmatprep.subr.mxu1 %v606_v61  ;;  %v826_v57 = vld [vmem:[%s2190_s2 + $0x8] sm:$0xff] }
  0xa7   : > { %670 = vmatpush1.msra.mxu0 %v601_v59  ;;  %1297 = vmatpush3.msra.mxu1 %v606_v61 }
  0xa8   : > { %671 = vmatprep.subr.mxu0 %v599_v60  ;;  %v822_v60 = vld [vmem:[%s2122_s29 + $0x8] sm:$0xff] }
  0xa9   : > { %672 = vmatpush1.msra.mxu0 %v598_v62 }
  0xaa   : > { %673 = vmatprep.subr.mxu0 %v596_v63 }
 0x113   : > { %v529_v14 = vpop.xlane.xlu0 %528  ;;  %v533_v15 = vpop.xlane.xlu1 %532 }
 0x114   : > { %v537_v16 = vmul.f32 0.0078125, %v529_v14  ;;  %v539_v17 = vmul.f32 0.0078125, %v533_v15 }
 0x116   : > { %v2128_v18 = vsub.f32 %v524_v0, %v537_v16  ;;  %v2130_v19 = vsub.f32 %v526_v1, %v539_v17  ;;  %v603_v0 = vld [vmem:[#allocation5 + $0x40] sm:$0xff] }
 0x117   : > { %v531_v20 = vpop.xlane.xlu0 %530  ;;  %v535_v21 = vpop.xlane.xlu1 %534  ;;  %v595_v1 = vld [vmem:[#allocation5] sm:$0xff]  ;;  %1298 = vmatprep.subr.mxu1 %v603_v0 }
 0x118   : > { %v538_v22 = vmul.f32 0.0078125, %v531_v20  ;;  %v545_v23 = vmul.f32 %v2128_v18, %v2128_v18  ;;  %v540_v24 = vmul.f32 0.0078125, %v535_v21  ;;  %v547_v27 = vmul.f32 %v2130_v19, %v2130_v19  ;;  %674 = vmatpush1.msra.mxu0 %v595_v1  ;;  %1299 = vmatpush3.msra.mxu1 %v603_v0  ;;  %v1233_v20 = vld [vmem:[%s2431_s1] ss:$0 sm:$0xff]  ;;  %s940_s1 = sadd.s32 %s1239_s25, %s1238_s18  ;;  %s2436_s18 = sld [smem:[#allocation35_spill]] }
 0x11a   : > { %v2134_v25 = vsub.f32 %v525_v2, %v538_v22  ;;  %549 = vadd.xlane.f32.xlu0 %v545_v23  ;;  %v2136_v26 = vsub.f32 %v527_v3, %v540_v24  ;;  %v1797_v2 = vmov 0.0   ;;  %v600_v3 = vld [vmem:[#allocation5 + $0x28] sm:$0xff]  ;;  %v1234_v22 = vld [vmem:[%s2432_s8] ss:$0 sm:$0xff]  ;;  %s1240_s8 = sshll.u32 %s940_s1, 7 }
 0x11b   : > { %707 = vmatprep.mubr.f32.mxu0 %v1797_v2  ;;  %1300 = vmatprep.subr.mxu1 %v600_v3  ;;  %s2247_s3 = scalar_lea.hbm %s2438_s0, %s1240_s8 }
 0x11c   : > { %v546_v28 = vmul.f32 %v2134_v25, %v2134_v25  ;;  %v548_v29 = vmul.f32 %v2136_v26, %v2136_v26  ;;  %1301 = vmatpush3.msra.mxu1 %v600_v3 }
 0x11d   : > { %1302 = vmatprep.subr.mxu1 %v597_v4 }
 0x11e   : > { %553 = vadd.xlane.f32.xlu0 %v547_v27  ;;  %551 = vadd.xlane.f32.xlu1 %v546_v28  ;;  %s2437_s25 = smov %s2436_s18  ;;  %s2241_s1 = scalar_lea.hbm %s2436_s18, %s1240_s8 }
 0x11f   : > { %1303 = vmatpush3.msra.mxu1 %v597_v4  ;;  %v830_v4 = vld [vmem:[%s2196_s6 + $0x8] sm:$0xff] }
 0x122   : > { %555 = vadd.xlane.f32.xlu1 %v548_v29 }
 0x1a3   : > { %v550_v5 = vpop.xlane.xlu0 %549 }
 0x1a4   : > { %v557_v6 = vmul.f32 0.0078125, %v550_v5 }
 0x1a6   : > { %v561_v7 = vadd.f32 1e-05, %v557_v6 }
 0x1a7   : > { %v552_v8 = vpop.xlane.xlu1 %551  ;;  %v554_v9 = vpop.xlane.xlu0 %553 }
 0x1a8   : > { %1456 = vrsqrt.f32 %v561_v7  ;;  %v558_v10 = vmul.f32 0.0078125, %v552_v8  ;;  %v559_v11 = vmul.f32 0.0078125, %v554_v9 }
 0x1aa   : > { %v562_v12 = vadd.f32 1e-05, %v558_v10  ;;  %v563_v13 = vadd.f32 1e-05, %v559_v11 }
 0x1ab   : > { %v556_v14 = vpop.xlane.xlu1 %555 }
 0x1ac   : > { %1458 = vrsqrt.f32 %v562_v12  ;;  %v560_v15 = vmul.f32 0.0078125, %v556_v14 }
 0x1ad   : > { %1460 = vrsqrt.f32 %v563_v13 }
 0x1ae   : > { %v564_v16 = vadd.f32 1e-05, %v560_v15 }
 0x1b0   : > { %1462 = vrsqrt.f32 %v564_v16 }
 0x1b5   : > { %v1457_v17 = vpop.eup %1456 }
 0x1b6   : > { %v569_v21 = vmul.f32 %v1457_v17, %v2128_v18 }
 0x1b8   : > { %v580_v23 = vmul.f32 %v1233_v20, %v569_v21 }
 0x1b9   : > { %v1459_v24 = vpop.eup %1458 }
 0x1ba   : > { %v1461_v27 = vpop.eup %1460  ;;  %v591_v28 = vadd.f32 %v1234_v22, %v580_v23  ;;  %v570_v29 = vmul.f32 %v1459_v24, %v2134_v25  ;;  %v823_v23 = vld [vmem:[%s2122_s29 + $0x10] sm:$0xff] }
 0x1bb   : > { %v571_v30 = vmul.f32 %v1461_v27, %v2130_v19  ;;  %v827_v24 = vld [vmem:[%s2190_s2 + $0x10] sm:$0xff] }
 0x1bc   : > { %708 = vmatmul.mubr.f32.vlgmr.msra.gmra.mxu0 %v591_v28  ;;  %1304 = vmatprep.mubr.f32.mxu1 %v591_v28  ;;  %v581_v31 = vmul.f32 %v1233_v20, %v570_v29  ;;  %v831_v29 = vld [vmem:[%s2196_s6 + $0x10] sm:$0xff] }
 0x1bd   : > { %v1463_v32 = vpop.eup %1462  ;;  %713 = vmatprep.mubr.f32.mxu0 %v1797_v2  ;;  %v582_v33 = vmul.f32 %v1233_v20, %v571_v30 }
 0x1be   : > { %v592_v34 = vadd.f32 %v1234_v22, %v581_v31  ;;  %v572_v18 = vmul.f32 %v1463_v32, %v2136_v26 }
 0x1bf   : > { %v593_v35 = vadd.f32 %v1234_v22, %v582_v33 }
 0x1c0   : > { %714 = vmatmul.mubr.f32.gmra.mxu0 %v592_v34  ;;  %1305 = vmatmul.mubr.f32.vlgmr.msra.gmra.mxu1 %v592_v34  ;;  %v583_v36 = vmul.f32 %v1233_v20, %v572_v18 }
 0x1c1   : > { %1307 = vmatprep.mubr.f32.mxu1 %v593_v35  ;;  %719 = vmatprep.mubr.f32.mxu0 %v1797_v2 }
 0x1c2   : > { %v594_v37 = vadd.f32 %v1234_v22, %v583_v36 }
 0x1c4   : > { %720 = vmatmul.mubr.f32.gmra.mxu0 %v593_v35  ;;  %1308 = vmatmul.mubr.f32.gmra.mxu1 %v594_v37 }
 0x1c5   : > { %725 = vmatprep.mubr.f32.mxu0 %v1797_v2 }
 0x1c8   : > { %726 = vmatmul.mubr.f32.gmra.mxu0 %v594_v37 }
 0x27c   : > { %v709_v19 = vpop.f32.mrf.mxu0 }
 0x27d   : > { %v817_v26 = vmul.f32 0.17677669, %v709_v19 }
 0x27e   : > { %v711_v25 = vpop.f32.mrf.mxu0 }
 0x27f   : > { %877 = vrot.lane.b32.xlu0 %v711_v25, %s1798_s27  ;;  %v873_v59 = vmul.f32 %v821_v53, %v711_v25  ;;  %v833_v5 = vmul.f32 %v821_v53, %v817_v26 }
 0x280   : > { %v715_v38 = vpop.f32.mrf.mxu0  ;;  %v1306_v39 = vpop.f32.mrf.mxu1 }
 0x281   : > { %914 = vst [vmem:[%s2156_s4 + $0x8] sm:$0xff] %v1306_v39  ;;  %v818_v43 = vmul.f32 0.17677669, %v715_v38  ;;  %v828_v39 = vld [vmem:[%s2190_s2 + $0x18] sm:$0xff]  ;;  %s2435_s2 = sld [smem:[#allocation34_spill]] }
 0x282   : > { %v717_v40 = vpop.f32.mrf.mxu0  ;;  %v798_v41 = vpop.f32.mrf.mxu1 }
 0x283   : > { %913 = vst [vmem:[%s2156_s4] sm:$0xff] %v798_v41  ;;  %837 = vrot.lane.b32.xlu0 %v817_v26, %s1798_s27  ;;  %879 = vrot.lane.b32.xlu1 %v717_v40, %s1798_s27  ;;  %v874_v3 = vmul.f32 %v822_v60, %v717_v40  ;;  %v834_v14 = vmul.f32 %v822_v60, %v818_v43 }
 0x284   : > { %v1309_v42 = vpop.f32.mrf.mxu1  ;;  %v721_v45 = vpop.f32.mrf.mxu0 }
 0x285   : > { %916 = vst [vmem:[%s2156_s4 + $0x18] sm:$0xff] %v1309_v42  ;;  %v2168_v46 = vmul.f32 0.17677669, %v721_v45 }
 0x286   : > { %v808_v44 = vpop.f32.mrf.mxu1  ;;  %v723_v47 = vpop.f32.mrf.mxu0 }
 0x287   : > { %915 = vst [vmem:[%s2156_s4 + $0x10] sm:$0xff] %v808_v44  ;;  %893 = vrot.lane.b32.xlu0 %v711_v25, %s2389_s7  ;;  %839 = vrot.lane.b32.xlu1 %v818_v43, %s1798_s27  ;;  %v875_v31 = vmul.f32 %v823_v23, %v723_v47  ;;  %v835_v34 = vmul.f32 %v823_v23, %v2168_v46 }
 0x288   : > { %v727_v48 = vpop.f32.mrf.mxu0 }
 0x289   : > { %v2181_v50 = vmul.f32 0.17677669, %v727_v48 }
 0x28a   : > { %v2175_v49 = vpop.f32.mrf.mxu0 }
 0x28b   : > { %853 = vrot.lane.b32.xlu0 %v817_v26, %s2389_s7  ;;  %895 = vrot.lane.b32.xlu1 %v717_v40, %s2389_s7  ;;  %v824_v40 = vld [vmem:[%s2122_s29 + $0x18] sm:$0xff]  ;;  %s2439_s29 = sand.u32 1, %s2019_s21  }
 0x28c   : > { %v876_v44 = vmul.f32 %v824_v40, %v2175_v49  ;;  %s2251_s4 = scalar_lea.sflag [#allocation12], %s2439_s29 }
 0x28f   : > { %855 = vrot.lane.b32.xlu1 %v818_v43, %s2389_s7  ;;  %841 = vrot.lane.b32.xlu0 %v2168_v46, %s1798_s27  ;;  %v832_v43 = vld [vmem:[%s2196_s6 + $0x18] sm:$0xff]  ;;  %s2234_s6 = scalar_lea.hbm %s2435_s2, %s1240_s8 }
 0x293   : > { %897 = vrot.lane.b32.xlu0 %v723_v47, %s2389_s7  ;;  %881 = vrot.lane.b32.xlu1 %v723_v47, %s1798_s27 }
 0x297   : > { %857 = vrot.lane.b32.xlu0 %v2168_v46, %s2389_s7  ;;  %883 = vrot.lane.b32.xlu1 %v2175_v49, %s1798_s27 }
 0x29b   : > { %843 = vrot.lane.b32.xlu1 %v2181_v50, %s1798_s27  ;;  %s943_s27 = sshll.u32 %s2207_s26, 4  ;;  %s2236_s27 = int_to_ptr.vmem [resolvable:$true] %s943_s27 }
 0x29f   : > { %899 = vrot.lane.b32.xlu1 %v2175_v49, %s2389_s7 }
 0x2a3   : > { %859 = vrot.lane.b32.xlu1 %v2181_v50, %s2389_s7 }
 0x2f1   : > { %v878_v51 = vpop.permute.xlu0 %877 }
 0x2f2   : > { %v885_v56 = vmul.f32 %v878_v51, %v825_v52  ;;  %v836_v51 = vmul.f32 %v824_v40, %v2181_v50 }
 0x2f4   : > { %v889_v0 = vadd.f32 %v885_v56, %v873_v59 }
 0x2f5   : > { %v880_v54 = vpop.permute.xlu1 %879  ;;  %v838_v55 = vpop.permute.xlu0 %837 }
 0x2f6   : > { %v886_v61 = vmul.f32 %v880_v54, %v826_v57  ;;  %v845_v1 = vmul.f32 %v838_v55, %v825_v52 }
 0x2f8   : > { %v890_v7 = vadd.f32 %v886_v61, %v874_v3  ;;  %v849_v10 = vadd.f32 %v845_v1, %v833_v5 }
 0x2f9   : > { %v840_v62 = vpop.permute.xlu1 %839  ;;  %v894_v63 = vpop.permute.xlu0 %893 }
 0x2fa   : > { %v901_v2 = vmul.f32 %v894_v63, %v829_v58  ;;  %v846_v11 = vmul.f32 %v840_v62, %v826_v57 }
 0x2fc   : > { %v905_v6 = vadd.f32 %v901_v2, %v889_v0  ;;  %v850_v21 = vadd.f32 %v846_v11, %v834_v14 }
 0x2fd   : > { %v896_v8 = vpop.permute.xlu1 %895  ;;  %v854_v9 = vpop.permute.xlu0 %853 }
 0x2fe   : > { %909 = vst [vmem:[%s2202_s23] sm:$0xff] %v905_v6  ;;  %v902_v12 = vmul.f32 %v896_v8, %v830_v4  ;;  %v861_v13 = vmul.f32 %v854_v9, %v829_v58 }
 0x300   : > { %v906_v15 = vadd.f32 %v902_v12, %v890_v7  ;;  %v865_v16 = vadd.f32 %v861_v13, %v849_v10 }
 0x301   : > { %v856_v17 = vpop.permute.xlu1 %855  ;;  %v842_v20 = vpop.permute.xlu0 %841 }
 0x302   : > { %910 = vst [vmem:[%s2202_s23 + $0x8] sm:$0xff] %v906_v15  ;;  %869 = vst [vmem:[%s2207_s26] sm:$0xff] %v865_v16  ;;  %v862_v22 = vmul.f32 %v856_v17, %v830_v4  ;;  %v847_v32 = vmul.f32 %v842_v20, %v827_v24 }
 0x304   : > { %v866_v27 = vadd.f32 %v862_v22, %v850_v21  ;;  %v851_v19 = vadd.f32 %v847_v32, %v835_v34 }
 0x305   : > { %v882_v28 = vpop.permute.xlu1 %881  ;;  %v898_v30 = vpop.permute.xlu0 %897 }
 0x306   : > { %870 = vst [vmem:[%s2207_s26 + $0x8] sm:$0xff] %v866_v27  ;;  %v887_v33 = vmul.f32 %v882_v28, %v827_v24  ;;  %v903_v35 = vmul.f32 %v898_v30, %v831_v29 }
 0x308   : > { %v891_v18 = vadd.f32 %v887_v33, %v875_v31 }
 0x309   : > { %v884_v36 = vpop.permute.xlu1 %883  ;;  %v858_v37 = vpop.permute.xlu0 %857 }
 0x30a   : > { %v907_v25 = vadd.f32 %v903_v35, %v891_v18  ;;  %v863_v38 = vmul.f32 %v858_v37, %v831_v29  ;;  %v888_v42 = vmul.f32 %v884_v36, %v828_v39 }
 0x30c   : > { %911 = vst [vmem:[%s2202_s23 + $0x10] sm:$0xff] %v907_v25  ;;  %v867_v26 = vadd.f32 %v863_v38, %v851_v19  ;;  %v892_v46 = vadd.f32 %v888_v42, %v876_v44 }
 0x30d   : > { %v844_v41 = vpop.permute.xlu1 %843 }
 0x30e   : > { %871 = vst [vmem:[%s2207_s26 + $0x10] sm:$0xff] %v867_v26  ;;  %v848_v47 = vmul.f32 %v844_v41, %v828_v39 }
 0x310   : > { %v852_v53 = vadd.f32 %v848_v47, %v836_v51 }
 0x311   : > { %v900_v45 = vpop.permute.xlu1 %899 }
 0x312   : > { %v904_v48 = vmul.f32 %v900_v45, %v832_v43 }
 0x314   : > { %v908_v52 = vadd.f32 %v904_v48, %v892_v46 }
 0x315   : > { %v860_v49 = vpop.permute.xlu1 %859 }
 0x316   : > { %912 = vst [vmem:[%s2202_s23 + $0x18] sm:$0xff] %v908_v52  ;;  %v864_v54 = vmul.f32 %v860_v49, %v832_v43 }
 0x317   : > { %1615 = shalt.err (!%p1612_p11)
}
 0x318   : > { %s1616_s21 = scalar_lea.hbm %s2234_s6, 512  ;;  %s1620_s9 = scalar_lea.hbm %s2435_s2, 2048 }
 0x319   : > { %p1617_p12 = scmp.ne.s32.totalorder %s2234_s6, %s1616_s21  ;;  %p1621_p13 = scmp.lt.s32.totalorder %s2234_s6, %s2435_s2 }
 0x31a   : > { %p1622_p8 = scmp.lt.s32.totalorder %s1620_s9, %s1616_s21 }
 0x31b   : > { %p1618_p5 = pnand %p1617_p12, %p2045_p9 }
 0x31c   : > { %p1623_p2 = por %p1622_p8, %p1621_p13 }
 0x31d   : > { %p1619_p10 = pneg %p1618_p5 }
 0x31f   : > { %p1624_p3 = pnand %p1623_p2, %p1619_p10 }
 0x321   : > { %1627 = shalt.err (!%p1624_p3)
}
 0x322   : > { %s1801_s17 = smov 128   ;;  %s2440_s18 = smov 8   ;;  %v868_v50 = vadd.f32 %v864_v54, %v852_v53 }
 0x323   : > { %1323 = dma.vmem_to_hbm [thread:$0]  (%p2045_p9), %s2228_s15, 512, %s2234_s6, %s2251_s4, %s1801_s17, %s1801_s17, %s2440_s18  }
 0x324   : > { %s1628_s29 = scalar_lea.vmem %s2225_s16, 512  ;;  %s1802_s20 = smov [#allocation13]  }
 0x325   : > { %p1629_p7 = scmp.ne.s32.totalorder %s2225_s16, %s1628_s29  ;;  %s1632_s22 = sshll.u32 %s1802_s20, 4  ;;  %s1633_s22 = int_to_ptr.vmem [resolvable:$false] %s1632_s22 }
 0x326   : > { %s1634_s21 = scalar_lea.vmem %s1633_s22, 1024  ;;  %p1635_p0 = scmp.lt.s32.totalorder %s2225_s16, %s1633_s22 }
 0x327   : > { %p1630_p1 = pnand %p1629_p7, %p2045_p9  ;;  %p1636_p4 = scmp.lt.s32.totalorder %s1634_s21, %s1628_s29 }
 0x329   : > { %p1631_p6 = pneg %p1630_p1  ;;  %p1637_p11 = por %p1636_p4, %p1635_p0 }
 0x32b   : > { %p1638_p12 = pnand %p1637_p11, %p1631_p6 }
 0x32d   : > { %1641 = shalt.err (!%p1638_p12)
}
 0x32e   : > { %s1642_s15 = scalar_lea.hbm %s2241_s1, 512  ;;  %s1646_s7 = scalar_lea.hbm %s2437_s25, 2048 }
 0x32f   : > { %p1643_p5 = scmp.ne.s32.totalorder %s2241_s1, %s1642_s15  ;;  %p1647_p8 = scmp.lt.s32.totalorder %s2241_s1, %s2437_s25 }
 0x330   : > { %p1648_p2 = scmp.lt.s32.totalorder %s1646_s7, %s1642_s15 }
 0x331   : > { %p1644_p10 = pnand %p1643_p5, %p2045_p9 }
 0x332   : > { %p1649_p3 = por %p1648_p2, %p1647_p8 }
 0x333   : > { %p1645_p13 = pneg %p1644_p10 }
 0x335   : > { %p1650_p7 = pnand %p1649_p3, %p1645_p13 }
 0x337   : > { %1653 = shalt.err (!%p1650_p7)
}
 0x338   : > { %1324 = dma.vmem_to_hbm [thread:$0]  (%p2045_p9), %s2225_s16, 512, %s2241_s1, %s2251_s4, %s1801_s17, %s1801_s17, %s2440_s18  }
 0x339   : > { %872 = vst [vmem:[%s2207_s26 + $0x18] sm:$0xff] %v868_v50  ;;  %s2441_s8 = sand.u32 1, %s1762_s13   ;;  %s1654_s20 = scalar_lea.vmem %s2236_s27, 512 }
 0x33a   : > { %s918_s29 = scalar_lea.sflag [#allocation4], %s2441_s8  ;;  %p1655_p1 = scmp.ne.s32.totalorder %s2236_s27, %s1654_s20 }
 0x33b   : > { %s1803_s22 = smov [#allocation10]  }
 0x33c   : > { %p1656_p6 = pnand %p1655_p1, %p2045_p9  ;;  %s1658_s21 = sshll.u32 %s1803_s22, 4  ;;  %s1659_s21 = int_to_ptr.vmem [resolvable:$false] %s1658_s21 }
 0x33d   : > { %s1660_s15 = scalar_lea.vmem %s1659_s21, 1024  ;;  %p1661_p4 = scmp.lt.s32.totalorder %s2236_s27, %s1659_s21 }
 0x33e   : > { %p1657_p0 = pneg %p1656_p6  ;;  %p1662_p11 = scmp.lt.s32.totalorder %s1660_s15, %s1654_s20 }
 0x340   : > { %p1663_p12 = por %p1662_p11, %p1661_p4 }
 0x342   : > { %p1664_p5 = pnand %p1663_p12, %p1657_p0 }
 0x344   : > { %1667 = shalt.err (!%p1664_p5)
}
 0x345   : > { %s1668_s26 = scalar_lea.hbm %s2247_s3, 512  ;;  %s1672_s4 = scalar_lea.hbm %s2438_s0, 2048 }
 0x346   : > { %p1669_p10 = scmp.ne.s32.totalorder %s2247_s3, %s1668_s26  ;;  %p1673_p2 = scmp.lt.s32.totalorder %s2247_s3, %s2438_s0 }
 0x347   : > { %p1674_p3 = scmp.lt.s32.totalorder %s1672_s4, %s1668_s26 }
 0x348   : > { %p1670_p13 = pnand %p1669_p10, %p2045_p9 }
 0x349   : > { %p1675_p7 = por %p1674_p3, %p1673_p2 }
 0x34a   : > { %p1671_p8 = pneg %p1670_p13 }
 0x34c   : > { %p1676_p1 = pnand %p1675_p7, %p1671_p8 }
 0x34e   : > { %1679 = shalt.err (!%p1676_p1)
}
 0x34f   : > { %1322 = dma.vmem_to_hbm [thread:$0]  (%p2045_p9), %s2236_s27, 512, %s2247_s3, %s918_s29, %s1801_s17, %s1801_s17, %s2440_s18  }
 0x350 PF: > { %p1358_p6 = scmp.ge.s32.totalorder %s1786_s19, 2  ;;  %s994_s7 = sand.u32 1, %s1758_s12  }
 0x351   : > { %p2442_p0 = scmp.ne.s32.totalorder %s2420_s30, 0  ;;  %s995_s9 = scalar_lea.sflag [#allocation4], %s994_s7 }
 0x353   : > { %p1346_p4 = pnand %p1358_p6, %p2442_p0 }
 0x355   : > { %p1347_p11 = pneg %p1346_p4 }
 0x357   : > { %1737 = dma.done.wait (%p1347_p11), %s995_s9, 512  }
 0x358   : > { %1739 = vsyncadd (%p1347_p11), %s995_s9, 4294966784  ;;  %s2443_s28 = sadd.s32 4294967294, %s1786_s19  }
 0x359   : > { %s1003_s23 = sand.u32 1, %s2443_s28  }
 0x35a   : > { %s1004_s8 = scalar_lea.sflag [#allocation12], %s1003_s23 }
 0x35b   : > { %1741 = dma.done.wait (%p1347_p11), %s1004_s8, 1024  }
 0x35c   : > { %1743 = vsyncadd (%p1347_p11), %s1004_s8, 4294966272  ;;  %s30_s19 = sadd.s32 1, %s1786_s19   ;;  %s2444_s3 = sld [smem:[#allocation25_spill]] }
 0x35d   : > { %p27_p9 = scmp.ge.s32.totalorder %s30_s19, 6   ;;  %s2445_s15 = sld [smem:[#allocation21_spill]] }
 0x35e   : > { %s2446_s16 = sld [smem:[#allocation22_spill]]  ;;  %s2449_s30 = smov %s1750_s10 }
 0x35f   : > { %s2447_s17 = sld [smem:[#allocation23_spill]]  ;;  %s2450_s10 = smov %s1754_s11 }
 0x360   : > { %s2448_s18 = sld [smem:[#allocation24_spill]]  ;;  %s2451_s11 = smov %s1975_s24 }
 0x361   : > { %s2452_s12 = smov %s1762_s13  ;;  %s2453_s13 = smov %s1766_s14 }
 0x362   : > { %s2454_s14 = smov %s2444_s3  ;;  %29 = sbr.rel (!%p27_p9) target bundleno = 23 (0x17), region = 162 }
 0x367   :  { %1018 = vsyncpa [#allocation3], 1 }
 0x368   :  { %1020 = vsyncpa [#allocation3 + $0x1], 1 }
 0x369   :  { %1021 = vsyncpa [#allocation6], 1 }
 0x36a   :  { %1022 = vsyncpa [#allocation4], 1 }
 0x36b   :  { %1024 = vsyncpa [#allocation4 + $0x1], 1 }
 0x36c   :  { %1025 = vsyncpa [#allocation12], 1 }
 0x36d   :  { %1027 = vsyncpa [#allocation12 + $0x1], 1 }

</bundles_post_ra>
